<compile_context>
chip_gen: v7x
topology: tpu7x:2x2x1
jax: 0.10.0
libtpu: 0.0.40
codegen_flags: <defaults>
</compile_context>

<pallas_src>
import jax
import jax.numpy as jnp
from jax.experimental import pallas as pl
from jax.experimental.pallas import tpu as pltpu

_BLOCK_BUDGET_BYTES = 12 * 1024 * 1024  # per-input-block budget (double-buffered ~24 MiB)
_VMEM_LIMIT_BYTES = 48 * 1024 * 1024    # under v7x's 64 MiB VMEM; v5e/v6e have 128 MiB
_MAX_LANE_CHUNKS = 64                   # bound on unrolled 128-lane adds per grid step
_CASE2_ROW_TARGET = 256                 # desired row tile when HW must be tiled


def _round_up(x, m):
    return ((x + m - 1) // m) * m


def _round_down(x, m):
    return (x // m) * m


def _largest_divisor_leq(n, cap):
    """Largest divisor of n that is <= cap (0 if none)."""
    best = 0
    d = 1
    while d * d <= n:
        if n % d == 0:
            if d <= cap:
                best = max(best, d)
            q = n // d
            if q <= cap:
                best = max(best, q)
        d += 1
    return best


def _choose_tiles(rows, hw, itemsize):
    """Pick (TR, THW): row tile and HW tile sizes."""
    sublane = {4: 8, 2: 16, 1: 32}.get(itemsize, 8)
    rows_al = _round_up(max(rows, 1), sublane)

    # Case 1: the full HW extent fits per block with a reasonable row tile.
    max_tr = _round_down(_BLOCK_BUDGET_BYTES // max(hw * itemsize, 1), sublane)
    if max_tr >= min(rows_al, 16 * sublane):
        tr = min(rows_al, max_tr)
        thw = hw
    else:
        # Case 2: HW is large -- tile it in 128-lane multiples and accumulate.
        tr_target = min(rows_al, _round_up(_CASE2_ROW_TARGET, sublane))
        thw_max = _round_down(_BLOCK_BUDGET_BYTES // (tr_target * itemsize), 128)
        thw_max = max(min(thw_max, 128 * _MAX_LANE_CHUNKS), 128)
        thw = 0
        if hw % 128 == 0:
            # Prefer a 128-multiple divisor of HW near the budget so the ragged
            # column mask is never emitted at all.
            d = _largest_divisor_leq(hw // 128, thw_max // 128)
            if d * 128 * 8 >= thw_max:
                thw = 128 * d
        if thw == 0:
            thw = thw_max  # ragged last HW block; masked only on k == last
        tr = min(rows_al,
                 max(_round_down(_BLOCK_BUDGET_BYTES // (thw * itemsize), sublane),
                     sublane))

    # Prefer >= 2 row blocks so the "parallel" row axis can be split across
    # TensorCores (v7x megacore); costs only one extra grid step elsewhere.
    if tr >= rows and rows >= 2 * sublane:
        tr = _round_up((rows + 1) // 2, sublane)

    # A single row block may cover fewer rows than the sublane count; fall back
    # to the "block dim == full array dim" exception.
    tr = min(tr, rows)
    return tr, thw


def _make_single_pass_kernel(inv_hw):
    """Whole HW extent per block: sum lanes, scale, store. No scratch needed."""

    def gap_kernel(x_ref, o_ref):
        s = jnp.sum(x_ref[...].astype(jnp.float32), axis=1, keepdims=True)
        o_ref[...] = (s * inv_hw).astype(o_ref.dtype)

    return gap_kernel


def _make_accum_kernel(hw, thw, nk, inv_hw):
    """HW tiled over grid axis 1 with a lane-dense (TR, 128) f32 accumulator."""
    assert thw % 128 == 0 and thw // 128 <= _MAX_LANE_CHUNKS
    last_width = hw - (nk - 1) * thw  # valid columns in the final HW block

    def _partial_sum(x_ref, width):
        # Lane-dense (TR, 128) f32 partial sum of `width` (static) valid columns.
        full, rem = divmod(width, 128)
        parts = [x_ref[:, j * 128:(j + 1) * 128].astype(jnp.float32)
                 for j in range(full)]
        if rem:
            tail = x_ref[:, full * 128:(full + 1) * 128].astype(jnp.float32)
            lane = jax.lax.broadcasted_iota(jnp.int32, tail.shape, 1)
            parts.append(jnp.where(lane < rem, tail, 0.0))
        s = parts[0]
        for p in parts[1:]:
            s = s + p
        return s

    def gap_kernel(x_ref, o_ref, acc_ref):
        k = pl.program_id(1)

        @pl.when(k == 0)
        def _init():
            acc_ref[...] = jnp.zeros_like(acc_ref)

        if last_width == thw:
            # HW tiles evenly: single unmasked hot path, no column mask anywhere.
            acc_ref[...] += _partial_sum(x_ref, thw)
        else:
            # Masked math only on the final (ragged) HW block.
            @pl.when(k < nk - 1)
            def _full_blocks():
                acc_ref[...] += _partial_sum(x_ref, thw)

            @pl.when(k == nk - 1)
            def _ragged_block():
                acc_ref[...] += _partial_sum(x_ref, last_width)

        @pl.when(k == nk - 1)
        def _finalize():
            total = jnp.sum(acc_ref[...], axis=1, keepdims=True)
            o_ref[...] = (total * inv_hw).astype(o_ref.dtype)

    return gap_kernel


def global_average_pooling(x):
    """Pallas TPU equivalent of torch `x.mean([2, 3])` for NCHW input."""
    N, C, H, W = x.shape
    hw = H * W
    rows = N * C
    x2 = x.reshape(rows, hw)

    itemsize = jnp.dtype(x.dtype).itemsize
    tr, thw = _choose_tiles(rows, hw, itemsize)
    nrow = pl.cdiv(rows, tr)
    nk = pl.cdiv(hw, thw)
    inv_hw = 1.0 / float(hw)  # Python float -> trace-time immediate, not a captured const

    if nk == 1:
        out = pl.pallas_call(
            _make_single_pass_kernel(inv_hw),
            out_shape=jax.ShapeDtypeStruct((rows, 1), x.dtype),
            grid=(nrow,),
            in_specs=[pl.BlockSpec((tr, hw), lambda i: (i, 0))],
            out_specs=pl.BlockSpec((tr, 1), lambda i: (i, 0)),
            compiler_params=pltpu.CompilerParams(
                dimension_semantics=("parallel",),
                vmem_limit_bytes=_VMEM_LIMIT_BYTES,
            ),
        )(x2)
    else:
        out = pl.pallas_call(
            _make_accum_kernel(hw, thw, nk, inv_hw),
            out_shape=jax.ShapeDtypeStruct((rows, 1), x.dtype),
            grid=(nrow, nk),
            in_specs=[pl.BlockSpec((tr, thw), lambda i, k: (i, k))],
            out_specs=pl.BlockSpec((tr, 1), lambda i, k: (i, 0)),
            scratch_shapes=[pltpu.VMEM((tr, 128), jnp.float32)],
            compiler_params=pltpu.CompilerParams(
                dimension_semantics=("parallel", "arbitrary"),
                vmem_limit_bytes=_VMEM_LIMIT_BYTES,
            ),
        )(x2)

    return out[:, 0].reshape(N, C)


if __name__ == "__main__":
    def _check(key, shape, atol):
        x = jax.random.normal(key, shape, dtype=jnp.float32)
        y = global_average_pooling(x)
        jax.block_until_ready(y)
        y_ref = jnp.mean(x, axis=(2, 3))
        assert y.shape == shape[:2], (y.shape, shape)
        assert jnp.allclose(y, y_ref, atol=atol, rtol=1e-5), shape

    keys = jax.random.split(jax.random.PRNGKey(0), 5)

    _check(keys[0], (2, 4, 16, 16), 1e-5)    # spec-sized: single-pass, 128-aligned lanes
    _check(keys[1], (3, 5, 7, 9), 1e-5)      # ragged lanes + non-multiple-of-8 rows
    _check(keys[2], (4, 96, 32, 32), 1e-5)   # many rows: >= 2 blocks on the parallel row axis
    _check(keys[3], (1, 2, 640, 640), 3e-5)  # huge HW: tiled-HW accumulator, even tiling (no mask)
    _check(keys[4], (1, 2, 641, 641), 3e-5)  # huge HW: ragged last HW block (masked tail only)

    print("KERNEL_OK")
</pallas_src>

<mosaic_0001>
module attributes {stable_mosaic.version = 11 : i64} {
  func.func @gap_kernel(%arg0: i32, %arg1: memref<8x256xf32, #tpu.memory_space<vmem>>, %arg2: memref<8x1xf32, #tpu.memory_space<vmem>>) attributes {dimension_semantics = [#tpu.dimension_semantics<parallel>], iteration_bounds = array<i64: 1>, scalar_prefetch = 0 : i64, scratch_operands = 0 : i64, tpu.core_type = #tpu.core_type<tc>, window_params = [{transform_indices = @transform_0, window_bounds = array<i64: 8, 256>}, {transform_indices = @transform_1, window_bounds = array<i64: 8, 1>}]} {
    %c0 = arith.constant 0 : index
    %c0_0 = arith.constant 0 : index
    %0 = vector.load %arg1[%c0, %c0_0] : memref<8x256xf32, #tpu.memory_space<vmem>>, vector<8x256xf32>
    %cst = arith.constant dense<0.000000e+00> : vector<8xf32>
    %1 = vector.multi_reduction <add>, %0, %cst [1] : vector<8x256xf32> to vector<8xf32>
    %2 = vector.shape_cast %1 : vector<8xf32> to vector<8x1xf32>
    %cst_1 = arith.constant 3.906250e-03 : f32
    %3 = vector.broadcast %cst_1 : f32 to vector<8x1xf32>
    %4 = arith.mulf %2, %3 : vector<8x1xf32>
    %c0_2 = arith.constant 0 : index
    %c0_3 = arith.constant 0 : index
    %5 = vector.load %arg2[%c0_2, %c0_3] : memref<8x1xf32, #tpu.memory_space<vmem>>, vector<8x1xf32>
    tpu.vector_store %arg2[%c0_2, %c0_3], %4 {strides = array<i32>} : memref<8x1xf32, #tpu.memory_space<vmem>>, vector<8x1xf32>,
    return
  }
  func.func @transform_0(%arg0: i32) -> (i32, i32) {
    %c0_i32 = arith.constant 0 : i32
    %c0_i32_0 = arith.constant 0 : i32
    return %arg0, %c0_i32 : i32, i32
  }
  func.func @transform_1(%arg0: i32) -> (i32, i32) {
    %c0_i32 = arith.constant 0 : i32
    %c0_i32_0 = arith.constant 0 : i32
    return %arg0, %c0_i32 : i32, i32
  }
}

</mosaic_0001>

<bundles_post_ra>
// kernel: tpu_custom_call.1
= control target key start
LH: loop header
LB: loop body
LE: loop exit
PB: predicated region body
PF: predicated region fallthrough
CT: control target
= control target key end

     0   :  { %6 = vsyncpa [#allocation3], 0  ;;  %s58_s6 = smov [#allocation2]   ;;  %s84_s0 = inlined_call_operand.hbm [shape: f32[8,256], index: 0, kind: input, shape index: {}]   ;;  %s85_s1 = inlined_call_operand.vmem [shape: f32[8,1], index: 1, kind: output, shape index: {}]  }
   0x1   :  { %s13_s7 = sshll.u32 %s58_s6, 4  ;;  %s34_s10 = scalar_lea.hbm %s84_s0, 256  ;;  %s14_s7 = int_to_ptr.vmem [resolvable:$true] %s13_s7 }
   0x2   :  { %p35_p0 = scmp.ne.s32.totalorder %s84_s0, %s34_s10  ;;  %p38_p1 = scmp.lt.u32.totalorder %s34_s10, %s84_s0 }
   0x4   :  { %p40_p2 = pnand %p38_p1, %p35_p0 }
   0x6   :  { %43 = shalt.err (!%p40_p2)
}
   0x7   :  { %s44_s15 = scalar_lea.vmem %s14_s7, 256  ;;  %p49_p4 = scmp.lt.s32.totalorder %s14_s7, %s14_s7 }
   0x8   :  { %p45_p3 = scmp.ne.s32.totalorder %s14_s7, %s44_s15  ;;  %p50_p5 = scmp.lt.s32.totalorder %s44_s15, %s44_s15 }
   0xa   :  { %p51_p6 = por %p50_p5, %p49_p4 }
   0xc   :  { %p52_p7 = pnand %p51_p6, %p45_p3 }
   0xe   :  { %55 = shalt.err (!%p52_p7)
}
   0xf   :  { %16 = dma.hbm_to_vmem [thread:$0]  %s84_s0, 256, %s14_s7, [#allocation3]  }
  0x10   :  { %56 = dma.done.wait [#allocation3], 256  }
  0x11   :  { %57 = vsyncadd [#allocation3], 4294967040  ;;  %v20_v0 = vld [vmem:[#allocation2] sm:$0xff]  ;;  %v21_v1 = vld [vmem:[#allocation2 + $0x8] sm:$0xff]  ;;  %vm26_vm0 = vcmask 7168  }
  0x12   :  { %v22_v2 = vadd.f32 %v21_v1, %v20_v0 }
  0x14   :  { %23 = vadd.xlane.f32.xlu0 %v22_v2 }
  0xa1   :  { %v24_v3 = vpop.xlane.xlu0 %23 }
  0xa2   :  { %v25_v4 = vmul.f32 0.00390625, %v24_v3 }
  0xa4   :  { %27 = vst.msk [vmem:[%s85_s1] sm:$0xff] %vm26_vm0, %v25_v4 }
  0xa5   :  { %32 = vsyncpa [#allocation3], 1 }

</bundles_post_ra>
